<compile_context>
chip_gen: v6e
topology: v6e:2x2x1
jax: 0.10.0
libtpu: 0.0.40
codegen_flags: <defaults>
</compile_context>

<pallas_src>
import jax
import jax.numpy as jnp
from jax import lax
from jax.experimental import pallas as pl
from jax.experimental.pallas import tpu as pltpu

# bf16 matmul operands with f32 accumulation (MXU-native on v5e/v6e/v7x).
# Against a full-f32 reference this costs ~1e-2 abs error; the self-test compares
# against a reference using the same bf16 conv operands so it stays well inside tol.
MXU_DTYPE = jnp.bfloat16


def resblock_kernel(x_ref, w1_ref, b1_ref, w2_ref, b2_ref, se_ref, so_ref,
                    o_ref, pbuf):
    """One batch element per grid step.

    x_ref : (H, W*C)         input, lane-dense channels-last view (f32)
    w*_ref: (3, W*C, W*C)    banded conv weights per ky (BN scale folded, bf16)
    b*_ref: (1, W*C)         BN bias pre-tiled across W (f32, lane-dense add)
    se/so : (W*C, (W/2)*C)   0/1 column-pool selection matrices (even / odd groups)
    o_ref : (H/2, (W/2)*C)   pooled output
    pbuf  : (H+2, W*C) VMEM  y-halo padded activation scratch (f32)
    """
    H, WC = x_ref.shape
    H2 = H // 2

    x2d = x_ref[...].astype(jnp.float32)                          # (H, WC)

    # y-direction halo: two zero rows, re-zeroed every step (2 tiny stores) so the
    # kernel needs no program_id==0 one-shot init (megacore-safe).
    zrow = jnp.zeros((1, WC), jnp.float32)
    pbuf[0:1, :] = zrow
    pbuf[H + 1:H + 2, :] = zrow

    def conv3x3_bn(a2d, w_ref, b_ref):
        # x-direction zero padding is folded into the banded weights, so every
        # matmul operand stays in the lane-dense (rows, W*C) view: no reshapes,
        # no concats, 128 output lanes per pass.
        a_mx = a2d.astype(MXU_DTYPE)
        pbuf[1:H + 1, :] = a2d                                     # interior rows
        out = jnp.dot(a_mx, w_ref[1],                              # ky = 1 (center)
                      preferred_element_type=jnp.float32)
        out += jnp.dot(pbuf[0:H, :].astype(MXU_DTYPE), w_ref[0],   # ky = 0
                       preferred_element_type=jnp.float32)
        out += jnp.dot(pbuf[2:H + 2, :].astype(MXU_DTYPE), w_ref[2],  # ky = 2
                       preferred_element_type=jnp.float32)
        return out + b_ref[...]                                    # lane-dense bias

    # ---- conv1 -> BN1 -> ReLU -----------------------------------------------
    h1 = jnp.maximum(conv3x3_bn(x2d, w1_ref, b1_ref), 0.0)
    # ---- conv2 -> BN2 (no ReLU: skip_last_relu=True) --------------------------
    h2 = conv3x3_bn(h1, w2_ref, b2_ref)
    # ---- residual add -> ReLU (lane-dense, f32 VPU) ---------------------------
    y = jnp.maximum(x2d + h2, 0.0)

    # ---- MaxPool2d(kernel_size=2, stride=2) -----------------------------------
    # row pool: reuse pbuf for two stride-2 reads (no dedicated ybuf scratch)
    pbuf[0:H, :] = y
    rm = jnp.maximum(pbuf[pl.ds(0, H2, 2), :],                     # even rows
                     pbuf[pl.ds(1, H2, 2), :])                     # odd rows
    # column pool + compaction: two 0/1 selection matmuls on the idle MXU instead
    # of W/2 lane-sparse 8-wide slices + concat.
    pooled = jnp.maximum(
        jnp.dot(rm, se_ref[...], preferred_element_type=jnp.float32),
        jnp.dot(rm, so_ref[...], preferred_element_type=jnp.float32))
    o_ref[...] = pooled.astype(o_ref.dtype)


def _banded_conv_weights(w, s, W, C):
    """Banded per-ky weight matrices for the lane-dense conv matmul.

    w : (9, C_in, C_out) taps in (ky, kx) row-major order.
    s : (1, C) BN scale, folded into C_out.
    Returns (3, W*C, W*C) bf16 with
        Wb[ky, xin*C + ci, x*C + co] = (w*s)[ky, kx, ci, co]  iff  xin == x + kx - 1
    (out-of-range kx rows are simply absent -> implements the x zero-padding).
    """
    wf = (w * s.reshape(1, 1, C)).reshape(3, 3, C, C).astype(jnp.float32)
    bands = []
    for ky in range(3):
        m = jnp.zeros((W * C, W * C), jnp.float32)
        for kx in range(3):
            # D[xin, x] = 1 iff xin == x + kx - 1  <=>  col = row + (1 - kx)
            d = jnp.eye(W, W, k=1 - kx, dtype=jnp.float32)
            m = m + jnp.kron(d, wf[ky, kx])
        bands.append(m)
    return jnp.stack(bands).astype(MXU_DTYPE)


def _pool_select_matrices(W, C):
    """0/1 matrices so rm @ S_even / rm @ S_odd pick even / odd C-lane groups."""
    W2 = W // 2
    j = jnp.arange(W2)
    e_even = jnp.zeros((W, W2), jnp.float32).at[2 * j, j].set(1.0)
    e_odd = jnp.zeros((W, W2), jnp.float32).at[2 * j + 1, j].set(1.0)
    ic = jnp.eye(C, dtype=jnp.float32)
    return jnp.kron(e_even, ic), jnp.kron(e_odd, ic)


def resblock_forward(x, w1, s1, b1, w2, s2, b2):
    """x: (N, H, W, C) f32 NHWC; w*: (9, C, C) tap-major; s*/b*: (1, C) folded BN.

    Returns (N, H//2, W//2, C).
    """
    N, H, W, C = x.shape
    assert H % 2 == 0 and W % 2 == 0
    H2, W2, WC = H // 2, W // 2, W * C

    # Banded, BN-scale-folded, bf16 conv weights: built once, resident across grid.
    w1b = _banded_conv_weights(w1, s1, W, C)                       # (3, WC, WC)
    w2b = _banded_conv_weights(w2, s2, W, C)
    # BN bias tiled across W so the in-kernel bias add is lane-dense.
    b1t = jnp.tile(b1.reshape(1, C), (1, W))                       # (1, WC)
    b2t = jnp.tile(b2.reshape(1, C), (1, W))
    se, so = _pool_select_matrices(W, C)                           # (WC, W2*C) x2

    x2d = x.reshape(N, H, WC)                                      # lane-dense view

    w_spec = pl.BlockSpec((3, WC, WC), lambda n: (0, 0, 0))
    b_spec = pl.BlockSpec((1, WC), lambda n: (0, 0))
    s_spec = pl.BlockSpec((WC, W2 * C), lambda n: (0, 0))

    out = pl.pallas_call(
        resblock_kernel,
        out_shape=jax.ShapeDtypeStruct((N, H2, W2 * C), x.dtype),
        grid_spec=pltpu.PrefetchScalarGridSpec(
            num_scalar_prefetch=0,
            grid=(N,),
            in_specs=[
                pl.BlockSpec((None, H, WC), lambda n: (n, 0, 0)),   # x
                w_spec, b_spec,                                     # conv1 / BN1
                w_spec, b_spec,                                     # conv2 / BN2
                s_spec, s_spec,                                     # pool selection
            ],
            out_specs=pl.BlockSpec((None, H2, W2 * C), lambda n: (n, 0, 0)),
            scratch_shapes=[pltpu.VMEM((H + 2, WC), jnp.float32)],  # y-halo buffer
        ),
        compiler_params=pltpu.CompilerParams(
            dimension_semantics=("parallel",),
            vmem_limit_bytes=32 * 1024 * 1024),
    )(x2d, w1b, b1t, w2b, b2t, se, so)

    # TODO(synk): for production sizes add spatial strip tiling (grid=(N, H//strip),
    # 1-row halo, both axes "parallel") sized for v7x's 64 MiB VMEM, with a larger
    # vmem_limit on v5e/v6e, so per-step blocks fit and output stores stay >=128 lanes.
    return out.reshape(N, H2, W2, C)


def ref_forward(x, w1, s1, b1, w2, s2, b2):
    """Pure-JAX reference (NHWC) matching the PyTorch ResBlock forward.

    Conv operands are cast to MXU_DTYPE (same as the kernel), f32 accumulation, so
    the self-test tolerance is independent of bf16 rounding.
    """
    C = x.shape[-1]

    def conv_bn(a, w, s, b):
        wf = (w * s.reshape(1, 1, C)).reshape(3, 3, C, C).astype(MXU_DTYPE)
        out = lax.conv_general_dilated(
            a.astype(MXU_DTYPE), wf, window_strides=(1, 1),
            padding=((1, 1), (1, 1)),
            dimension_numbers=("NHWC", "HWIO", "NHWC"),
            preferred_element_type=jnp.float32)
        return out + b.reshape(1, 1, 1, C)

    h = jnp.maximum(conv_bn(x, w1, s1, b1), 0.0)
    h2 = conv_bn(h, w2, s2, b2)
    y = jnp.maximum(x + h2, 0.0)
    N, H, W, _ = y.shape
    return y.reshape(N, H // 2, 2, W // 2, 2, C).max(axis=(2, 4))


def fold_bn(gamma, beta, mean, var, eps=1e-5):
    inv = gamma / jnp.sqrt(var + eps)
    return inv.reshape(1, -1), (beta - mean * inv).reshape(1, -1)


if __name__ == "__main__":
    N, H, W, C = 2, 16, 16, 8     # NHWC (PyTorch NCHW: (2, 8, 16, 16)); W*C = 128
    key = jax.random.PRNGKey(0)
    kx, kw1, kw2 = jax.random.split(key, 3)

    x = jax.random.normal(kx, (N, H, W, C), dtype=jnp.float32)
    # conv weights: (9 taps in (ky,kx) row-major, C_in, C_out), deterministic
    w1 = 0.1 * jax.random.normal(kw1, (9, C, C), dtype=jnp.float32)
    w2 = 0.1 * jax.random.normal(kw2, (9, C, C), dtype=jnp.float32)

    ar = jnp.arange(C, dtype=jnp.float32)
    s1, b1 = fold_bn(1.0 + 0.10 * ar, 0.01 * ar, 0.05 * ar, 1.0 + 0.02 * ar)
    s2, b2 = fold_bn(1.0 - 0.05 * ar, -0.02 * ar, 0.03 * ar, 1.0 + 0.01 * ar)

    out = resblock_forward(x, w1, s1, b1, w2, s2, b2)
    out = jax.block_until_ready(out)

    ref = ref_forward(x, w1, s1, b1, w2, s2, b2)
    assert out.shape == (N, H // 2, W // 2, C)
    err = jnp.max(jnp.abs(out - ref))
    assert jnp.allclose(out, ref, atol=1e-2, rtol=1e-2), f"max abs err = {err}"

    print("KERNEL_OK")
</pallas_src>

<mosaic_0001>
module attributes {stable_mosaic.version = 11 : i64} {
  func.func @resblock_kernel(%arg0: i32, %arg1: memref<1x16x128xf32, #tpu.memory_space<vmem>>, %arg2: memref<3x128x128xbf16, #tpu.memory_space<vmem>>, %arg3: memref<1x128xf32, #tpu.memory_space<vmem>>, %arg4: memref<3x128x128xbf16, #tpu.memory_space<vmem>>, %arg5: memref<1x128xf32, #tpu.memory_space<vmem>>, %arg6: memref<128x64xf32, #tpu.memory_space<vmem>>, %arg7: memref<128x64xf32, #tpu.memory_space<vmem>>, %arg8: memref<1x8x64xf32, #tpu.memory_space<vmem>>, %arg9: memref<18x128xf32, #tpu.memory_space<vmem>>) attributes {dimension_semantics = [#tpu.dimension_semantics<parallel>], iteration_bounds = array<i64: 2>, scalar_prefetch = 0 : i64, scratch_operands = 1 : i64, tpu.core_type = #tpu.core_type<tc>, window_params = [{transform_indices = @transform_0, window_bounds = array<i64: 1, 16, 128>}, {pipeline_mode = #tpu.pipeline_mode<synchronous>, transform_indices = @transform_1, window_bounds = array<i64: 3, 128, 128>}, {pipeline_mode = #tpu.pipeline_mode<synchronous>, transform_indices = @transform_2, window_bounds = array<i64: 1, 128>}, {pipeline_mode = #tpu.pipeline_mode<synchronous>, transform_indices = @transform_3, window_bounds = array<i64: 3, 128, 128>}, {pipeline_mode = #tpu.pipeline_mode<synchronous>, transform_indices = @transform_4, window_bounds = array<i64: 1, 128>}, {pipeline_mode = #tpu.pipeline_mode<synchronous>, transform_indices = @transform_5, window_bounds = array<i64: 128, 64>}, {pipeline_mode = #tpu.pipeline_mode<synchronous>, transform_indices = @transform_6, window_bounds = array<i64: 128, 64>}, {transform_indices = @transform_7, window_bounds = array<i64: 1, 8, 64>}]} {
    %c0 = arith.constant 0 : index
    %c0_0 = arith.constant 0 : index
    %c0_1 = arith.constant 0 : index
    %0 = vector.load %arg1[%c0, %c0_0, %c0_1] : memref<1x16x128xf32, #tpu.memory_space<vmem>>, vector<1x16x128xf32>
    %1 = vector.shape_cast %0 : vector<1x16x128xf32> to vector<16x128xf32>
    %cst = arith.constant 0.000000e+00 : f32
    %2 = vector.broadcast %cst : f32 to vector<1x128xf32>
    %c0_2 = arith.constant 0 : index
    %c0_3 = arith.constant 0 : index
    %3 = vector.load %arg9[%c0_2, %c0_3] : memref<18x128xf32, #tpu.memory_space<vmem>>, vector<1x128xf32>
    tpu.vector_store %arg9[%c0_2, %c0_3], %2 {strides = array<i32>} : memref<18x128xf32, #tpu.memory_space<vmem>>, vector<1x128xf32>,
    %c17 = arith.constant 17 : index
    %c0_4 = arith.constant 0 : index
    %4 = vector.load %arg9[%c17, %c0_4] : memref<18x128xf32, #tpu.memory_space<vmem>>, vector<1x128xf32>
    tpu.vector_store %arg9[%c17, %c0_4], %2 {strides = array<i32>} : memref<18x128xf32, #tpu.memory_space<vmem>>, vector<1x128xf32>,
    %5 = arith.truncf %1 : vector<16x128xf32> to vector<16x128xbf16>
    %c1 = arith.constant 1 : index
    %c0_5 = arith.constant 0 : index
    %6 = vector.load %arg9[%c1, %c0_5] : memref<18x128xf32, #tpu.memory_space<vmem>>, vector<16x128xf32>
    tpu.vector_store %arg9[%c1, %c0_5], %1 {strides = array<i32>} : memref<18x128xf32, #tpu.memory_space<vmem>>, vector<16x128xf32>,
    %c1_6 = arith.constant 1 : index
    %c0_7 = arith.constant 0 : index
    %c0_8 = arith.constant 0 : index
    %7 = vector.load %arg2[%c1_6, %c0_7, %c0_8] : memref<3x128x128xbf16, #tpu.memory_space<vmem>>, vector<1x128x128xbf16>
    %8 = vector.shape_cast %7 : vector<1x128x128xbf16> to vector<128x128xbf16>
    %cst_9 = arith.constant dense<0.000000e+00> : vector<16x128xf32>
    %9 = tpu.matmul %5, %8, %cst_9 {dimension_numbers = #tpu.dot_dimension_numbers<[1], [0], [0], [1], [0, 0, 1, 1], [], []>} : vector<16x128xbf16>, vector<128x128xbf16>, vector<16x128xf32> -> vector<16x128xf32>
    %c0_10 = arith.constant 0 : index
    %c0_11 = arith.constant 0 : index
    %10 = vector.load %arg9[%c0_10, %c0_11] : memref<18x128xf32, #tpu.memory_space<vmem>>, vector<16x128xf32>
    %11 = arith.truncf %10 : vector<16x128xf32> to vector<16x128xbf16>
    %c0_12 = arith.constant 0 : index
    %c0_13 = arith.constant 0 : index
    %c0_14 = arith.constant 0 : index
    %12 = vector.load %arg2[%c0_12, %c0_13, %c0_14] : memref<3x128x128xbf16, #tpu.memory_space<vmem>>, vector<1x128x128xbf16>
    %13 = vector.shape_cast %12 : vector<1x128x128xbf16> to vector<128x128xbf16>
    %cst_15 = arith.constant dense<0.000000e+00> : vector<16x128xf32>
    %14 = tpu.matmul %11, %13, %cst_15 {dimension_numbers = #tpu.dot_dimension_numbers<[1], [0], [0], [1], [0, 0, 1, 1], [], []>} : vector<16x128xbf16>, vector<128x128xbf16>, vector<16x128xf32> -> vector<16x128xf32>
    %15 = arith.addf %9, %14 : vector<16x128xf32>
    %c2 = arith.constant 2 : index
    %c0_16 = arith.constant 0 : index
    %16 = vector.load %arg9[%c2, %c0_16] : memref<18x128xf32, #tpu.memory_space<vmem>>, vector<16x128xf32>
    %17 = arith.truncf %16 : vector<16x128xf32> to vector<16x128xbf16>
    %c2_17 = arith.constant 2 : index
    %c0_18 = arith.constant 0 : index
    %c0_19 = arith.constant 0 : index
    %18 = vector.load %arg2[%c2_17, %c0_18, %c0_19] : memref<3x128x128xbf16, #tpu.memory_space<vmem>>, vector<1x128x128xbf16>
    %19 = vector.shape_cast %18 : vector<1x128x128xbf16> to vector<128x128xbf16>
    %cst_20 = arith.constant dense<0.000000e+00> : vector<16x128xf32>
    %20 = tpu.matmul %17, %19, %cst_20 {dimension_numbers = #tpu.dot_dimension_numbers<[1], [0], [0], [1], [0, 0, 1, 1], [], []>} : vector<16x128xbf16>, vector<128x128xbf16>, vector<16x128xf32> -> vector<16x128xf32>
    %21 = arith.addf %15, %20 : vector<16x128xf32>
    %c0_21 = arith.constant 0 : index
    %c0_22 = arith.constant 0 : index
    %22 = vector.load %arg3[%c0_21, %c0_22] : memref<1x128xf32, #tpu.memory_space<vmem>>, vector<1x128xf32>
    %23 = vector.broadcast %22 : vector<1x128xf32> to vector<16x128xf32>
    %24 = arith.addf %21, %23 : vector<16x128xf32>
    %cst_23 = arith.constant 0.000000e+00 : f32
    %25 = vector.broadcast %cst_23 : f32 to vector<16x128xf32>
    %26 = arith.maximumf %24, %25 : vector<16x128xf32>
    %27 = arith.truncf %26 : vector<16x128xf32> to vector<16x128xbf16>
    %c1_24 = arith.constant 1 : index
    %c0_25 = arith.constant 0 : index
    %28 = vector.load %arg9[%c1_24, %c0_25] : memref<18x128xf32, #tpu.memory_space<vmem>>, vector<16x128xf32>
    tpu.vector_store %arg9[%c1_24, %c0_25], %26 {strides = array<i32>} : memref<18x128xf32, #tpu.memory_space<vmem>>, vector<16x128xf32>,
    %c1_26 = arith.constant 1 : index
    %c0_27 = arith.constant 0 : index
    %c0_28 = arith.constant 0 : index
    %29 = vector.load %arg4[%c1_26, %c0_27, %c0_28] : memref<3x128x128xbf16, #tpu.memory_space<vmem>>, vector<1x128x128xbf16>
    %30 = vector.shape_cast %29 : vector<1x128x128xbf16> to vector<128x128xbf16>
    %cst_29 = arith.constant dense<0.000000e+00> : vector<16x128xf32>
    %31 = tpu.matmul %27, %30, %cst_29 {dimension_numbers = #tpu.dot_dimension_numbers<[1], [0], [0], [1], [0, 0, 1, 1], [], []>} : vector<16x128xbf16>, vector<128x128xbf16>, vector<16x128xf32> -> vector<16x128xf32>
    %c0_30 = arith.constant 0 : index
    %c0_31 = arith.constant 0 : index
    %32 = vector.load %arg9[%c0_30, %c0_31] : memref<18x128xf32, #tpu.memory_space<vmem>>, vector<16x128xf32>
    %33 = arith.truncf %32 : vector<16x128xf32> to vector<16x128xbf16>
    %c0_32 = arith.constant 0 : index
    %c0_33 = arith.constant 0 : index
    %c0_34 = arith.constant 0 : index
    %34 = vector.load %arg4[%c0_32, %c0_33, %c0_34] : memref<3x128x128xbf16, #tpu.memory_space<vmem>>, vector<1x128x128xbf16>
    %35 = vector.shape_cast %34 : vector<1x128x128xbf16> to vector<128x128xbf16>
    %cst_35 = arith.constant dense<0.000000e+00> : vector<16x128xf32>
    %36 = tpu.matmul %33, %35, %cst_35 {dimension_numbers = #tpu.dot_dimension_numbers<[1], [0], [0], [1], [0, 0, 1, 1], [], []>} : vector<16x128xbf16>, vector<128x128xbf16>, vector<16x128xf32> -> vector<16x128xf32>
    %37 = arith.addf %31, %36 : vector<16x128xf32>
    %c2_36 = arith.constant 2 : index
    %c0_37 = arith.constant 0 : index
    %38 = vector.load %arg9[%c2_36, %c0_37] : memref<18x128xf32, #tpu.memory_space<vmem>>, vector<16x128xf32>
    %39 = arith.truncf %38 : vector<16x128xf32> to vector<16x128xbf16>
    %c2_38 = arith.constant 2 : index
    %c0_39 = arith.constant 0 : index
    %c0_40 = arith.constant 0 : index
    %40 = vector.load %arg4[%c2_38, %c0_39, %c0_40] : memref<3x128x128xbf16, #tpu.memory_space<vmem>>, vector<1x128x128xbf16>
    %41 = vector.shape_cast %40 : vector<1x128x128xbf16> to vector<128x128xbf16>
    %cst_41 = arith.constant dense<0.000000e+00> : vector<16x128xf32>
    %42 = tpu.matmul %39, %41, %cst_41 {dimension_numbers = #tpu.dot_dimension_numbers<[1], [0], [0], [1], [0, 0, 1, 1], [], []>} : vector<16x128xbf16>, vector<128x128xbf16>, vector<16x128xf32> -> vector<16x128xf32>
    %43 = arith.addf %37, %42 : vector<16x128xf32>
    %c0_42 = arith.constant 0 : index
    %c0_43 = arith.constant 0 : index
    %44 = vector.load %arg5[%c0_42, %c0_43] : memref<1x128xf32, #tpu.memory_space<vmem>>, vector<1x128xf32>
    %45 = vector.broadcast %44 : vector<1x128xf32> to vector<16x128xf32>
    %46 = arith.addf %43, %45 : vector<16x128xf32>
    %47 = arith.addf %1, %46 : vector<16x128xf32>
    %cst_44 = arith.constant 0.000000e+00 : f32
    %48 = vector.broadcast %cst_44 : f32 to vector<16x128xf32>
    %49 = arith.maximumf %47, %48 : vector<16x128xf32>
    %c0_45 = arith.constant 0 : index
    %c0_46 = arith.constant 0 : index
    %50 = vector.load %arg9[%c0_45, %c0_46] : memref<18x128xf32, #tpu.memory_space<vmem>>, vector<16x128xf32>
    tpu.vector_store %arg9[%c0_45, %c0_46], %49 {strides = array<i32>} : memref<18x128xf32, #tpu.memory_space<vmem>>, vector<16x128xf32>,
    %c0_47 = arith.constant 0 : index
    %c0_48 = arith.constant 0 : index
    %51 = tpu.strided_load %arg9[%c0_47, %c0_48] {strides = array<i32: 2, 1>} : memref<18x128xf32, #tpu.memory_space<vmem>>, vector<8x128xf32>
    %c1_49 = arith.constant 1 : index
    %c0_50 = arith.constant 0 : index
    %52 = tpu.strided_load %arg9[%c1_49, %c0_50] {strides = array<i32: 2, 1>} : memref<18x128xf32, #tpu.memory_space<vmem>>, vector<8x128xf32>
    %53 = arith.maximumf %51, %52 : vector<8x128xf32>
    %c0_51 = arith.constant 0 : index
    %c0_52 = arith.constant 0 : index
    %54 = vector.load %arg6[%c0_51, %c0_52] : memref<128x64xf32, #tpu.memory_space<vmem>>, vector<128x64xf32>
    %cst_53 = arith.constant dense<0.000000e+00> : vector<8x64xf32>
    %55 = tpu.matmul %53, %54, %cst_53 {dimension_numbers = #tpu.dot_dimension_numbers<[1], [0], [0], [1], [0, 0, 1, 1], [], []>} : vector<8x128xf32>, vector<128x64xf32>, vector<8x64xf32> -> vector<8x64xf32>
    %c0_54 = arith.constant 0 : index
    %c0_55 = arith.constant 0 : index
    %56 = vector.load %arg7[%c0_54, %c0_55] : memref<128x64xf32, #tpu.memory_space<vmem>>, vector<128x64xf32>
    %cst_56 = arith.constant dense<0.000000e+00> : vector<8x64xf32>
    %57 = tpu.matmul %53, %56, %cst_56 {dimension_numbers = #tpu.dot_dimension_numbers<[1], [0], [0], [1], [0, 0, 1, 1], [], []>} : vector<8x128xf32>, vector<128x64xf32>, vector<8x64xf32> -> vector<8x64xf32>
    %58 = arith.maximumf %55, %57 : vector<8x64xf32>
    %c0_57 = arith.constant 0 : index
    %c0_58 = arith.constant 0 : index
    %c0_59 = arith.constant 0 : index
    %59 = vector.load %arg8[%c0_57, %c0_58, %c0_59] : memref<1x8x64xf32, #tpu.memory_space<vmem>>, vector<1x8x64xf32>
    %60 = vector.shape_cast %59 : vector<1x8x64xf32> to vector<8x64xf32>
    %61 = vector.shape_cast %58 : vector<8x64xf32> to vector<1x8x64xf32>
    tpu.vector_store %arg8[%c0_57, %c0_58, %c0_59], %61 {strides = array<i32>} : memref<1x8x64xf32, #tpu.memory_space<vmem>>, vector<1x8x64xf32>,
    return
  }
  func.func @transform_0(%arg0: i32) -> (i32, i32, i32) {
    %c0_i32 = arith.constant 0 : i32
    %c0_i32_0 = arith.constant 0 : i32
    %c0_i32_1 = arith.constant 0 : i32
    return %arg0, %c0_i32, %c0_i32_0 : i32, i32, i32
  }
  func.func @transform_1(%arg0: i32) -> (i32, i32, i32) {
    %c0_i32 = arith.constant 0 : i32
    %c0_i32_0 = arith.constant 0 : i32
    %c0_i32_1 = arith.constant 0 : i32
    %c0_i32_2 = arith.constant 0 : i32
    return %c0_i32, %c0_i32_0, %c0_i32_1 : i32, i32, i32
  }
  func.func @transform_2(%arg0: i32) -> (i32, i32) {
    %c0_i32 = arith.constant 0 : i32
    %c0_i32_0 = arith.constant 0 : i32
    %c0_i32_1 = arith.constant 0 : i32
    return %c0_i32, %c0_i32_0 : i32, i32
  }
  func.func @transform_3(%arg0: i32) -> (i32, i32, i32) {
    %c0_i32 = arith.constant 0 : i32
    %c0_i32_0 = arith.constant 0 : i32
    %c0_i32_1 = arith.constant 0 : i32
    %c0_i32_2 = arith.constant 0 : i32
    return %c0_i32, %c0_i32_0, %c0_i32_1 : i32, i32, i32
  }
  func.func @transform_4(%arg0: i32) -> (i32, i32) {
    %c0_i32 = arith.constant 0 : i32
    %c0_i32_0 = arith.constant 0 : i32
    %c0_i32_1 = arith.constant 0 : i32
    return %c0_i32, %c0_i32_0 : i32, i32
  }
  func.func @transform_5(%arg0: i32) -> (i32, i32) {
    %c0_i32 = arith.constant 0 : i32
    %c0_i32_0 = arith.constant 0 : i32
    %c0_i32_1 = arith.constant 0 : i32
    return %c0_i32, %c0_i32_0 : i32, i32
  }
  func.func @transform_6(%arg0: i32) -> (i32, i32) {
    %c0_i32 = arith.constant 0 : i32
    %c0_i32_0 = arith.constant 0 : i32
    %c0_i32_1 = arith.constant 0 : i32
    return %c0_i32, %c0_i32_0 : i32, i32
  }
  func.func @transform_7(%arg0: i32) -> (i32, i32, i32) {
    %c0_i32 = arith.constant 0 : i32
    %c0_i32_0 = arith.constant 0 : i32
    %c0_i32_1 = arith.constant 0 : i32
    return %arg0, %c0_i32, %c0_i32_0 : i32, i32, i32
  }
}

</mosaic_0001>

<bundles_post_ra>
// kernel: tpu_custom_call.1
= control target key start
LH: loop header
LB: loop body
LE: loop exit
PB: predicated region body
PF: predicated region fallthrough
CT: control target
= control target key end

     0   :  { %12 = vsyncpa [#allocation4], 0  ;;  %s2493_s0 = inlined_call_operand.hbm [shape: f32[2,16,128], index: 0, kind: input, shape index: {}]   ;;  %s2494_s1 = inlined_call_operand.vmem [shape: bf16[3,128,128], index: 1, kind: input, shape index: {}]   ;;  %s2495_s2 = inlined_call_operand.hbm [shape: f32[1,128], index: 2, kind: input, shape index: {}]   ;;  %s2496_s3 = inlined_call_operand.vmem [shape: bf16[3,128,128], index: 3, kind: input, shape index: {}]   ;;  %s2497_s4 = inlined_call_operand.vmem [shape: f32[1,128], index: 4, kind: input, shape index: {}]   ;;  %s2498_s5 = inlined_call_operand.vmem [shape: f32[128,64], index: 5, kind: input, shape index: {}]   ;;  %s2499_s6 = inlined_call_operand.vmem [shape: f32[128,64], index: 6, kind: input, shape index: {}]   ;;  %s2500_s7 = inlined_call_operand.hbm [shape: f32[2,8,64], index: 7, kind: output, shape index: {}]  }
   0x1   :  { %14 = vsyncpa [#allocation4 + $0x1], 0 }
   0x2   :  { %15 = vsyncpa [#allocation7], 0 }
   0x3   :  { %16 = vsyncpa [#allocation5], 0 }
   0x4   :  { %18 = vsyncpa [#allocation5 + $0x1], 0  ;;  %s1958_s24 = smov 0   ;;  %s1960_s25 = smov 0  }
   0x5   :  { %s1962_s26 = smov 0   ;;  %s1964_s27 = smov 0  }
   0x6 LB: > { %2508 = sst [smem:[#allocation12_spill]] %s1905_s26  ;;  %s1979_s28 = sadd.s32 4294967295, %s1909_s27   ;;  %s1909_s27 = sphi %s1964_s27, %s2526_s27   ;;  %s1905_s26 = sphi %s1962_s26, %s2528_s26   ;;  %s1901_s25 = sphi %s1960_s25, %s2530_s25   ;;  %s1897_s24 = sphi %s1958_s24, %s2529_s24  }
   0x7   : > { %s1270_s29 = sadd.s32 4294967294, %s1909_s27   ;;  %s1983_s30 = sadd.s32 1, %s1909_s27  }
   0x8   : > { %2509 = sst [smem:[#allocation13_spill]] %s1983_s30  ;;  %s31_s8 = sadd.s32 1, %s1905_s26 }
   0x9   : > { %s28_s9 = ssub.s32 %s1909_s27, %s1983_s30  ;;  %p38_p0 = scmp.ne.s32.totalorder %s1905_s26, %s1901_s25 }
   0xa   : > { %p29_p1 = scmp.eq.s32.totalorder %s28_s9, 0  ;;  %p39_p2 = scmp.eq.s32.totalorder %s1909_s27, 0 }
   0xb   : > { %p44_p3 = scmp.ne.s32.totalorder %s1901_s25, %s1897_s24  ;;  %p2501_p4 = scmp.eq.s32.totalorder %s1979_s28, 0 }
   0xc   : > { %s1995_s10 = scalar_select %p29_p1, %s1905_s26, %s31_s8  }
   0xd   : > { %p1997_p5 = por %p39_p2, %p38_p0  ;;  %p2003_p6 = por %p2501_p4, %p44_p3 }
   0xe   : > { %2510 = sst [smem:[#allocation14_spill]] %s1995_s10  ;;  %p194_p7 = scmp.eq.s32.totalorder %s1979_s28, 1 }
   0xf   : > { %s2512_s12 = scalar_select %p2003_p6, 1, 0 }
  0x10   : > { %p200_p8 = scmp.eq.s32.totalorder %s1270_s29, 1  ;;  %p1271_p9 = scmp.ge.s32.totalorder %s1909_s27, 1 }
  0x11   : > { %p207_p10 = scmp.lt.s32.totalorder %s1909_s27, 3  ;;  %p2010_p11 = por %p194_p7, %p38_p0 }
  0x12   : > { %p2014_p12 = por %p200_p8, %p44_p3  ;;  %s1911_s16 = smov [#allocation6]  }
  0x13   : > { %s2513_s13 = scalar_select %p2010_p11, 1, 0 }
  0x14   : > { %s2514_s14 = scalar_select %p2014_p12, 1, 0 }
  0x15   : > { %p2018_p13 = pnand %p1271_p9, %p207_p10  ;;  %s223_s17 = sshll.u32 %s1911_s16, 4  ;;  %s224_s17 = int_to_ptr.vmem [resolvable:$true] %s223_s17 }
  0x16   : > { %p1699_p4 = scmp.lt.s32.totalorder %s1909_s27, 2  ;;  %p2516_p0 = scmp.eq.s32.totalorder %s1979_s28, 0 }
  0x17   : > { %s2515_s15 = scalar_select %p2018_p13, 1, 0 }
  0x18   : > { %p1686_p2 = pneg %p2018_p13  ;;  %s246_s19 = sand.u32 1, %s1905_s26  }
  0x19   : > { %p2035_p3 = pnand %p1699_p4, %p1997_p5  ;;  %s1274_s21 = sshll.u32 %s246_s19, 4 }
  0x1a   : > { %p2028_p7 = pnand %p1686_p2, %p2516_p0  ;;  %s1798_s22 = scalar_lea.vmem %s224_s17, 16 }
  0x1b   : > { %p1799_p9 = scmp.ne.s32.totalorder %s224_s17, %s1798_s22  ;;  %s1805_s23 = scalar_lea.vmem %s224_s17, 32 }
  0x1c   : > { %p1789_p8 = pneg %p2028_p7  ;;  %p1806_p12 = scmp.lt.s32.totalorder %s224_s17, %s224_s17 }
  0x1d   : > { %p1807_p2 = scmp.lt.s32.totalorder %s1805_s23, %s1798_s22 }
  0x1e   : > { %p1801_p10 = pnand %p1799_p9, %p1789_p8 }
  0x1f   : > { %p1808_p0 = por %p1807_p2, %p1806_p12 }
  0x20   : > { %p1802_p1 = pneg %p1801_p10 }
  0x22   : > { %p1809_p11 = pnand %p1808_p0, %p1802_p1 }
  0x24   : > { %1812 = shalt.err (!%p1809_p11)
}
  0x25   : > { %1689 = dma.hbm_to_vmem [thread:$0]  (!%p2028_p7), %s2495_s2, 16, %s224_s17, [#allocation7]  }
  0x26   : > { %s1399_s9 = sshll.u32 %s1909_s27, 8  ;;  %s250_s11 = scalar_lea.vmem [#allocation3], %s1274_s21 }
  0x27   : > { %s257_s16 = sshll.u32 %s250_s11, 4  ;;  %s2050_s30 = scalar_lea.hbm %s2493_s0, %s1399_s9  ;;  %s2052_s16 = int_to_ptr.vmem [resolvable:$true] %s257_s16 }
  0x28   : > { %s2054_s18 = scalar_lea.sflag [#allocation4], %s246_s19  ;;  %s1813_s22 = scalar_lea.hbm %s2050_s30, 256 }
  0x29   : > { %p1814_p4 = scmp.ne.s32.totalorder %s2050_s30, %s1813_s22  ;;  %p1815_p5 = pneg %p2035_p3 }
  0x2a   : > { %s1818_s23 = scalar_lea.hbm %s2493_s0, 512  ;;  %p1819_p1 = scmp.lt.s32.totalorder %s2050_s30, %s2493_s0 }
  0x2b   : > { %p1816_p11 = pnand %p1815_p5, %p1814_p4  ;;  %p1820_p7 = scmp.lt.s32.totalorder %s1818_s23, %s1813_s22 }
  0x2d   : > { %p1817_p12 = pneg %p1816_p11  ;;  %p1821_p8 = por %p1820_p7, %p1819_p1 }
  0x2f   : > { %p1822_p9 = pnand %p1821_p8, %p1817_p12 }
  0x31   : > { %1825 = shalt.err (!%p1822_p9)
}
  0x32   : > { %s1826_s19 = scalar_lea.vmem %s2052_s16, 256  ;;  %s1912_s29 = smov [#allocation3]  }
  0x33   : > { %p1827_p10 = scmp.ne.s32.totalorder %s2052_s16, %s1826_s19  ;;  %s1831_s8 = sshll.u32 %s1912_s29, 4  ;;  %s1832_s8 = int_to_ptr.vmem [resolvable:$false] %s1831_s8 }
  0x34   : > { %s1833_s9 = scalar_lea.vmem %s1832_s8, 512  ;;  %p1834_p4 = scmp.lt.s32.totalorder %s2052_s16, %s1832_s8 }
  0x35   : > { %p1829_p2 = pnand %p1827_p10, %p1815_p5  ;;  %p1835_p11 = scmp.lt.s32.totalorder %s1833_s9, %s1826_s19 }
  0x37   : > { %p1830_p0 = pneg %p1829_p2  ;;  %p1836_p6 = por %p1835_p11, %p1834_p4 }
  0x39   : > { %p1837_p13 = pnand %p1836_p6, %p1830_p0 }
  0x3b   : > { %1840 = shalt.err (!%p1837_p13)
}
  0x3c   : > { %s1913_s11 = smov 128   ;;  %s1914_s22 = smov 8  }
  0x3d   : > { %1693 = dma.hbm_to_vmem [thread:$0]  (!%p2035_p3), %s2050_s30, 256, %s2052_s16, %s2054_s18, %s1913_s11, %s1913_s11, %s1914_s22  }
  0x3e   : > { %p2519_p5 = scmp.ne.s32.totalorder %s2515_s15, 0 }
  0x3f   : > { %s2078_s17 = sand.u32 (!%p2519_p5), 1, %s1901_s25   ;;  %p2520_p6 = scmp.ne.s32.totalorder (!%p2519_p5), %s2512_s12, 0 }
  0x40   : > { %269 = sbr.rel (%p2519_p5) target bundleno = 807 (0x327), region = 48  ;;  %s1278_s21 = sshll.u32 (!%p2519_p5), %s2078_s17, 4 }
  0x41   : > { %s272_s23 = scalar_lea.sflag (!%p2519_p5), [#allocation4], %s2078_s17  ;;  %s2082_s26 = scalar_lea.vmem (!%p2519_p5), [#allocation3], %s1278_s21 }
  0x45   : > { %1884 = dma.done.wait (%p2520_p6), %s272_s23, 256  }
  0x46   : > { %1886 = vsyncadd (%p2520_p6), %s272_s23, 4294967040  ;;  %p2521_p13 = scmp.eq.s32.totalorder %s1979_s28, 0 }
  0x48   : > { %1888 = dma.done.wait (%p2521_p13), [#allocation7], 16   ;;  %p2522_p3 = pmov %p2521_p13 }
  0x49   : > { %v1915_v0 = vmov 0.0   ;;  %vm1916_vm0 = vmmov 0   ;;  %v1739_v1 = vld [vmem:[%s2494_s1 + $0x38] sm:$0xff]   ;;  %v1741_v3 = vld [vmem:[%s2494_s1 + $0x30] sm:$0xff]   ;;  %v1743_v5 = vld [vmem:[%s2494_s1 + $0x28] sm:$0xff]   ;;  %s1280_s20 = sshll.u32 %s2078_s17, 3 }
  0x4a   : > { %1890 = vsyncadd (%p2522_p3), [#allocation7], 4294967280  ;;  %1488 = vmatprep.subr.bf16.mxu0 %v1915_v0  ;;  %313 = vst [vmem:[#allocation2] sm:$0x1] %v1915_v0  ;;  %1508 = vmatprep.subr.bf16.mxu1 %v1915_v0  ;;  %v1740_v2 = vld [vmem:[%s2494_s1 + $0x78] sm:$0xff]   ;;  %v1742_v4 = vld [vmem:[%s2494_s1 + $0x70] sm:$0xff]  }
  0x4b   : > { %314 = vst [vmem:[#allocation2 + $0x11] sm:$0x1] %v1915_v0  ;;  %1504 = vmatprep.mubr.msk.bf16.mxu0 %vm1916_vm0, %v1915_v0  ;;  %1524 = vmatprep.mubr.msk.bf16.mxu1 %vm1916_vm0, %v1915_v0  ;;  %v1744_v6 = vld [vmem:[%s2494_s1 + $0x68] sm:$0xff]   ;;  %v1745_v7 = vld [vmem:[%s2494_s1 + $0x20] sm:$0xff]   ;;  %v1747_v9 = vld [vmem:[%s2494_s1 + $0x18] sm:$0xff]   ;;  %s1396_s16 = sshll.u32 %s1979_s28, 7 }
  0x4c   : > { %1489 = vmatpush3.bf16.msra.mxu0 %v1739_v1  ;;  %1509 = vmatpush3.bf16.msra.mxu1 %v1740_v2  ;;  %v1746_v8 = vld [vmem:[%s2494_s1 + $0x60] sm:$0xff]   ;;  %v1748_v10 = vld [vmem:[%s2494_s1 + $0x58] sm:$0xff]   ;;  %v1749_v13 = vld [vmem:[%s2494_s1 + $0x10] sm:$0xff]   ;;  %s309_s18 = scalar_lea.vmem [#allocation8], %s1280_s20  ;;  %vm1174_vm1 = vcmask 523264   ;;  %s1177_s28 = scalar_lea.sflag [#allocation5], %s2078_s17 }
  0x4d   : > { %1490 = vmatprep.subr.bf16.mxu0 %v1915_v0  ;;  %1510 = vmatprep.subr.bf16.mxu1 %v1915_v0  ;;  %v2139_v11 = vld [vmem:[%s2082_s26] sm:$0xff]  ;;  %v2142_v12 = vld [vmem:[%s2082_s26 + $0x8] sm:$0xff]  ;;  %s1190_s10 = sshll.u32 %s309_s18, 4  ;;  %s2450_s26 = scalar_lea.hbm %s2500_s7, %s1396_s16  ;;  %s2452_s10 = int_to_ptr.vmem [resolvable:$true] %s1190_s10 }
  0x4e   : > { %316 = vst [vmem:[#allocation2 + $0x1] sm:$0xff] %v2139_v11  ;;  %317 = vst [vmem:[#allocation2 + $0x9] sm:$0xff] %v2142_v12  ;;  %v1750_v14 = vld [vmem:[%s2494_s1 + $0x50] sm:$0xff]   ;;  %v1751_v15 = vld [vmem:[%s2494_s1 + $0x8] sm:$0xff]   ;;  %v315_v23 = vpack.c.bf16 %v2142_v12, %v2139_v11  ;;  %s1841_s8 = scalar_lea.vmem %s2452_s10, 128  ;;  %p2523_p1 = scmp.ne.s32.totalorder %s2513_s13, 0 }
  0x4f   : > { %v1752_v16 = vld [vmem:[%s2494_s1 + $0x48] sm:$0xff]   ;;  %v1753_v17 = vld [vmem:[%s2494_s1] sm:$0xff]   ;;  %v1755_v21 = vld [vmem:[%s2494_s1 + $0xb8] sm:$0xff]   ;;  %p1842_p12 = scmp.ne.s32.totalorder %s2452_s10, %s1841_s8  ;;  %s1917_s9 = smov [#allocation8]  }
  0x50   : > { %1491 = vmatpush3.bf16.msra.mxu0 %v1741_v3  ;;  %1511 = vmatpush3.bf16.msra.mxu1 %v1742_v4  ;;  %v1754_v18 = vld [vmem:[%s2494_s1 + $0x40] sm:$0xff]   ;;  %v1756_v24 = vld [vmem:[%s2494_s1 + $0xb0] sm:$0xff]   ;;  %v1757_v25 = vld [vmem:[%s2494_s1 + $0xa8] sm:$0xff]   ;;  %s1845_s11 = sshll.u32 %s1917_s9, 4  ;;  %s1846_s11 = int_to_ptr.vmem [resolvable:$false] %s1845_s11 }
  0x51   : > { %1492 = vmatprep.subr.bf16.mxu0 %v1915_v0  ;;  %1512 = vmatprep.subr.bf16.mxu1 %v1915_v0  ;;  %v1758_v26 = vld [vmem:[%s2494_s1 + $0xa0] sm:$0xff]   ;;  %v1759_v27 = vld [vmem:[%s2494_s1 + $0x98] sm:$0xff]   ;;  %v1760_v28 = vld [vmem:[%s2494_s1 + $0x90] sm:$0xff]   ;;  %p1843_p7 = pnand %p1842_p12, %p2523_p1  ;;  %s1847_s22 = scalar_lea.vmem %s1846_s11, 256 }
  0x52   : > { %v1761_v29 = vld [vmem:[%s2494_s1 + $0x88] sm:$0xff]   ;;  %v1762_v30 = vld [vmem:[%s2494_s1 + $0x80] sm:$0xff]   ;;  %v1763_v34 = vld [vmem:[%s2496_s3 + $0x78] sm:$0xff]   ;;  %p1848_p9 = scmp.lt.s32.totalorder %s2452_s10, %s1846_s11  ;;  %p1849_p10 = scmp.lt.s32.totalorder %s1847_s22, %s1841_s8 }
  0x53   : > { %v1765_v35 = vld [vmem:[%s2496_s3 + $0x38] sm:$0xff]   ;;  %v1764_v36 = vld [vmem:[%s2496_s3 + $0x70] sm:$0xff]   ;;  %v1766_v38 = vld [vmem:[%s2496_s3 + $0x68] sm:$0xff]   ;;  %p1844_p8 = pneg %p1843_p7 }
  0x54   : > { %1493 = vmatpush3.bf16.msra.mxu0 %v1743_v5  ;;  %1513 = vmatpush3.bf16.msra.mxu1 %v1744_v6  ;;  %v1767_v37 = vld [vmem:[%s2496_s3 + $0x30] sm:$0xff]   ;;  %v1769_v39 = vld [vmem:[%s2496_s3 + $0x28] sm:$0xff]   ;;  %v1768_v40 = vld [vmem:[%s2496_s3 + $0x60] sm:$0xff]   ;;  %p1850_p2 = por %p1849_p10, %p1848_p9 }
  0x55   : > { %1494 = vmatprep.subr.bf16.mxu0 %v1915_v0  ;;  %1514 = vmatprep.subr.bf16.mxu1 %v1915_v0  ;;  %v335_v19 = vld [vmem:[#allocation2] sm:$0xff]  ;;  %v336_v20 = vld [vmem:[#allocation2 + $0x8] sm:$0xff]  ;;  %v1770_v41 = vld [vmem:[%s2496_s3 + $0x58] sm:$0xff]  }
  0x56   : > { %v337_v22 = vpack.c.bf16 %v336_v20, %v335_v19  ;;  %v532_v31 = vld [vmem:[#allocation2 + $0x2] sm:$0xff]  ;;  %v533_v32 = vld [vmem:[#allocation2 + $0xa] sm:$0xff]  ;;  %v1773_v44 = vld [vmem:[%s2496_s3 + $0x18] sm:$0xff]   ;;  %p1851_p0 = pnand %p1850_p2, %p1844_p8 }
  0x57   : > { %v534_v33 = vpack.c.bf16 %v533_v32, %v532_v31  ;;  %v1771_v42 = vld [vmem:[%s2496_s3 + $0x20] sm:$0xff]   ;;  %v1772_v43 = vld [vmem:[%s2496_s3 + $0x50] sm:$0xff]   ;;  %v1774_v45 = vld [vmem:[%s2496_s3 + $0x48] sm:$0xff]  }
  0x58   : > { %1495 = vmatpush3.bf16.msra.mxu0 %v1745_v7  ;;  %1515 = vmatpush3.bf16.msra.mxu1 %v1746_v8  ;;  %v1775_v46 = vld [vmem:[%s2496_s3 + $0x10] sm:$0xff]   ;;  %v1776_v47 = vld [vmem:[%s2496_s3 + $0x40] sm:$0xff]   ;;  %v1777_v48 = vld [vmem:[%s2496_s3 + $0x8] sm:$0xff]  }
  0x59   : > { %1496 = vmatprep.subr.bf16.mxu0 %v1915_v0  ;;  %1516 = vmatprep.subr.bf16.mxu1 %v1915_v0  ;;  %v1778_v49 = vld [vmem:[%s2496_s3] sm:$0xff]   ;;  %v1337_v60 = vld [vmem:[#allocation6] ss:$0 sm:$0xff]  ;;  %v1784_v19 = vld [vmem:[%s2496_s3 + $0x90] sm:$0xff]  }
  0x5a   : > { %v1785_v20 = vld [vmem:[%s2496_s3 + $0x88] sm:$0xff]   ;;  %v1013_v31 = vld [vmem:[%s2498_s5 + $0x60] sm:$0xff] }
  0x5b   : > { %v1099_v32 = vld [vmem:[%s2499_s6 + $0x60] sm:$0xff] }
  0x5c   : > { %1497 = vmatpush3.bf16.msra.mxu0 %v1747_v9  ;;  %1517 = vmatpush3.bf16.msra.mxu1 %v1748_v10 }
  0x5d   : > { %1498 = vmatprep.subr.bf16.mxu0 %v1915_v0  ;;  %1518 = vmatprep.subr.bf16.mxu1 %v1915_v0 }
  0x60   : > { %1499 = vmatpush3.bf16.msra.mxu0 %v1749_v13  ;;  %1519 = vmatpush3.bf16.msra.mxu1 %v1750_v14  ;;  %v1779_v13 = vld [vmem:[%s2496_s3 + $0xb8] sm:$0xff]  }
  0x61   : > { %1500 = vmatprep.subr.bf16.mxu0 %v1915_v0  ;;  %1520 = vmatprep.subr.bf16.mxu1 %v1915_v0 }
  0x64   : > { %1501 = vmatpush3.bf16.msra.mxu0 %v1751_v15  ;;  %1521 = vmatpush3.bf16.msra.mxu1 %v1752_v16  ;;  %v1780_v15 = vld [vmem:[%s2496_s3 + $0xb0] sm:$0xff]   ;;  %v1781_v16 = vld [vmem:[%s2496_s3 + $0xa8] sm:$0xff]  }
  0x65   : > { %1502 = vmatprep.subr.bf16.mxu0 %v1915_v0  ;;  %1522 = vmatprep.subr.bf16.mxu1 %v1915_v0 }
  0x68   : > { %1503 = vmatpush3.bf16.msra.mxu0 %v1753_v17  ;;  %1523 = vmatpush3.bf16.msra.mxu1 %v1754_v18  ;;  %v1782_v17 = vld [vmem:[%s2496_s3 + $0xa0] sm:$0xff]   ;;  %v1783_v18 = vld [vmem:[%s2496_s3 + $0x98] sm:$0xff]  }
  0x69   : > { %1528 = vmatprep.subr.bf16.mxu0 %v1915_v0  ;;  %1548 = vmatprep.subr.bf16.mxu1 %v1915_v0 }
  0x6b   : > { %1505 = vmatmul.mubr.bf16.vlgmr.msra.gmra.mxu0 %v337_v22  ;;  %1525 = vmatmul.mubr.bf16.vlgmr.msra.gmra.mxu1 %v315_v23 }
  0x6c   : > { %1529 = vmatpush3.bf16.msra.mxu0 %v1755_v21  ;;  %1544 = vmatprep.mubr.msk.bf16.mxu0 %vm1916_vm0, %v1915_v0  ;;  %v1786_v21 = vld [vmem:[%s2496_s3 + $0x80] sm:$0xff]  }
  0x6d   : > { %1530 = vmatprep.subr.bf16.mxu0 %v1915_v0  ;;  %1564 = vmatprep.mubr.msk.bf16.mxu1 %vm1916_vm0, %v1915_v0 }
  0x6e   : > { %1549 = vmatpush3.bf16.msra.mxu1 %v1765_v35  ;;  %v1011_v35 = vld [vmem:[%s2498_s5 + $0x50] sm:$0xff] }
  0x6f   : > { %1550 = vmatprep.subr.bf16.mxu1 %v1915_v0 }
  0x70   : > { %1531 = vmatpush3.bf16.msra.mxu0 %v1756_v24 }
  0x71   : > { %1532 = vmatprep.subr.bf16.mxu0 %v1915_v0 }
  0x72   : > { %1551 = vmatpush3.bf16.msra.mxu1 %v1767_v37  ;;  %v1010_v37 = vld [vmem:[%s2498_s5 + $0x48] sm:$0xff] }
  0x73   : > { %1552 = vmatprep.subr.bf16.mxu1 %v1915_v0 }
  0x74   : > { %1533 = vmatpush3.bf16.msra.mxu0 %v1757_v25  ;;  %v1016_v25 = vld [vmem:[%s2498_s5 + $0x78] sm:$0xff] }
  0x75   : > { %1534 = vmatprep.subr.bf16.mxu0 %v1915_v0 }
  0x76   : > { %1553 = vmatpush3.bf16.msra.mxu1 %v1769_v39  ;;  %v1009_v39 = vld [vmem:[%s2498_s5 + $0x40] sm:$0xff] }
  0x77   : > { %1554 = vmatprep.subr.bf16.mxu1 %v1915_v0 }
  0x78   : > { %1535 = vmatpush3.bf16.msra.mxu0 %v1758_v26  ;;  %v1102_v26 = vld [vmem:[%s2499_s6 + $0x78] sm:$0xff] }
  0x79   : > { %1536 = vmatprep.subr.bf16.mxu0 %v1915_v0 }
  0x7a   : > { %1555 = vmatpush3.bf16.msra.mxu1 %v1771_v42  ;;  %v1094_v42 = vld [vmem:[%s2499_s6 + $0x38] sm:$0xff] }
  0x7b   : > { %1556 = vmatprep.subr.bf16.mxu1 %v1915_v0 }
  0x7c   : > { %1537 = vmatpush3.bf16.msra.mxu0 %v1759_v27  ;;  %v1015_v27 = vld [vmem:[%s2498_s5 + $0x70] sm:$0xff] }
  0x7d   : > { %1538 = vmatprep.subr.bf16.mxu0 %v1915_v0 }
  0x7e   : > { %1557 = vmatpush3.bf16.msra.mxu1 %v1773_v44  ;;  %v1093_v44 = vld [vmem:[%s2499_s6 + $0x30] sm:$0xff] }
  0x7f   : > { %1558 = vmatprep.subr.bf16.mxu1 %v1915_v0 }
  0x80   : > { %1539 = vmatpush3.bf16.msra.mxu0 %v1760_v28  ;;  %v1101_v28 = vld [vmem:[%s2499_s6 + $0x70] sm:$0xff] }
  0x81   : > { %1540 = vmatprep.subr.bf16.mxu0 %v1915_v0 }
  0x82   : > { %1559 = vmatpush3.bf16.msra.mxu1 %v1775_v46  ;;  %v1092_v46 = vld [vmem:[%s2499_s6 + $0x28] sm:$0xff] }
  0x83   : > { %1560 = vmatprep.subr.bf16.mxu1 %v1915_v0 }
  0x84   : > { %1541 = vmatpush3.bf16.msra.mxu0 %v1761_v29  ;;  %v1014_v29 = vld [vmem:[%s2498_s5 + $0x68] sm:$0xff] }
  0x85   : > { %1542 = vmatprep.subr.bf16.mxu0 %v1915_v0 }
  0x86   : > { %1561 = vmatpush3.bf16.msra.mxu1 %v1777_v48  ;;  %v1091_v48 = vld [vmem:[%s2499_s6 + $0x20] sm:$0xff] }
  0x87   : > { %1562 = vmatprep.subr.bf16.mxu1 %v1915_v0 }
  0x88   : > { %1543 = vmatpush3.bf16.msra.mxu0 %v1762_v30  ;;  %v1100_v30 = vld [vmem:[%s2499_s6 + $0x68] sm:$0xff] }
  0x89   : > { %1568 = vmatprep.subr.bf16.mxu0 %v1915_v0 }
  0x8a   : > { %1563 = vmatpush3.bf16.msra.mxu1 %v1778_v49  ;;  %v1004_v49 = vld [vmem:[%s2498_s5 + $0x18] sm:$0xff] }
  0x8b   : > { %1545 = vmatmul.mubr.bf16.vlgmr.msra.gmra.mxu0 %v534_v33  ;;  %1588 = vmatprep.subr.bf16.mxu1 %v1915_v0  ;;  %v1012_v33 = vld [vmem:[%s2498_s5 + $0x58] sm:$0xff] }
  0x8c   : > { %1584 = vmatprep.mubr.msk.bf16.mxu0 %vm1916_vm0, %v1915_v0  ;;  %1569 = vmatpush3.bf16.msra.mxu0 %v1763_v34  ;;  %v1098_v34 = vld [vmem:[%s2499_s6 + $0x58] sm:$0xff] }
  0x8d   : > { %1570 = vmatprep.subr.bf16.mxu0 %v1915_v0 }
  0x90   : > { %1571 = vmatpush3.bf16.msra.mxu0 %v1764_v36  ;;  %v1097_v36 = vld [vmem:[%s2499_s6 + $0x50] sm:$0xff] }
  0x91   : > { %1572 = vmatprep.subr.bf16.mxu0 %v1915_v0 }
  0x94   : > { %1573 = vmatpush3.bf16.msra.mxu0 %v1766_v38  ;;  %v1096_v38 = vld [vmem:[%s2499_s6 + $0x48] sm:$0xff] }
  0x95   : > { %1574 = vmatprep.subr.bf16.mxu0 %v1915_v0 }
  0x98   : > { %1575 = vmatpush3.bf16.msra.mxu0 %v1768_v40  ;;  %v1095_v40 = vld [vmem:[%s2499_s6 + $0x40] sm:$0xff] }
  0x99   : > { %1576 = vmatprep.subr.bf16.mxu0 %v1915_v0 }
  0x9c   : > { %1577 = vmatpush3.bf16.msra.mxu0 %v1770_v41  ;;  %v1008_v41 = vld [vmem:[%s2498_s5 + $0x38] sm:$0xff] }
  0x9d   : > { %1578 = vmatprep.subr.bf16.mxu0 %v1915_v0 }
  0xa0   : > { %1579 = vmatpush3.bf16.msra.mxu0 %v1772_v43  ;;  %v1007_v43 = vld [vmem:[%s2498_s5 + $0x30] sm:$0xff] }
  0xa1   : > { %1580 = vmatprep.subr.bf16.mxu0 %v1915_v0 }
  0xa4   : > { %1581 = vmatpush3.bf16.msra.mxu0 %v1774_v45  ;;  %v1006_v45 = vld [vmem:[%s2498_s5 + $0x28] sm:$0xff] }
  0xa5   : > { %1582 = vmatprep.subr.bf16.mxu0 %v1915_v0 }
  0xa8   : > { %1583 = vmatpush3.bf16.msra.mxu0 %v1776_v47  ;;  %v1005_v47 = vld [vmem:[%s2498_s5 + $0x20] sm:$0xff] }
  0xa9   : > { %1608 = vmatprep.subr.mxu0 %v1915_v0 }
 0x12b   : > { %v436_v50 = vpop.f32.mrf.mxu0  ;;  %v525_v51 = vpop.f32.mrf.mxu1 }
 0x12c   : > { %v526_v58 = vadd.f32 %v525_v51, %v436_v50  ;;  %v1090_v50 = vld [vmem:[%s2499_s6 + $0x18] sm:$0xff]  ;;  %v1003_v51 = vld [vmem:[%s2498_s5 + $0x10] sm:$0xff] }
 0x12d   : > { %v1506_v52 = vpop.f32.mrf.mxu0  ;;  %v1526_v53 = vpop.f32.mrf.mxu1 }
 0x12e   : > { %v1089_v52 = vld [vmem:[%s2499_s6 + $0x10] sm:$0xff]  ;;  %v1002_v53 = vld [vmem:[%s2498_s5 + $0x8] sm:$0xff] }
 0x12f   : > { %v439_v54 = vpop.f32.mrf.mxu0  ;;  %v528_v55 = vpop.f32.mrf.mxu1 }
 0x130   : > { %v529_v63 = vadd.f32 %v528_v55, %v439_v54  ;;  %v1088_v54 = vld [vmem:[%s2499_s6 + $0x8] sm:$0xff]  ;;  %v1001_v55 = vld [vmem:[%s2498_s5] sm:$0xff] }
 0x131   : > { %v1507_v56 = vpop.f32.mrf.mxu0  ;;  %v1527_v57 = vpop.f32.mrf.mxu1 }
 0x132   : > { %v1087_v56 = vld [vmem:[%s2499_s6] sm:$0xff] }
 0x14b   : > { %v634_v59 = vpop.f32.mrf.mxu0 }
 0x14c   : > { %v641_v61 = vadd.f32 %v634_v59, %v526_v58 }
 0x14d   : > { %v1546_v62 = vpop.f32.mrf.mxu0 }
 0x14e   : > { %v650_v1 = vadd.f32 %v1337_v60, %v641_v61 }
 0x14f   : > { %v637_v2 = vpop.f32.mrf.mxu0 }
 0x150   : > { %v652_v3 = vmax.f32 %v650_v1, 0.0  ;;  %v642_v4 = vadd.f32 %v637_v2, %v529_v63 }
 0x151   : > { %v1547_v5 = vpop.f32.mrf.mxu0 }
 0x152   : > { %655 = vst [vmem:[#allocation2 + $0x1] sm:$0xff] %v652_v3  ;;  %v651_v6 = vadd.f32 %v1337_v60, %v642_v4  ;;  %v1394_v4 = vld [vmem:[%s2497_s4] ss:$0 sm:$0xff] }
 0x154   : > { %v653_v7 = vmax.f32 %v651_v6, 0.0 }
 0x156   : > { %v654_v8 = vpack.c.bf16 %v653_v7, %v652_v3  ;;  %656 = vst [vmem:[#allocation2 + $0x9] sm:$0xff] %v653_v7 }
 0x158   : > { %1585 = vmatmul.mubr.bf16.vlgmr.msra.gmra.mxu0 %v654_v8 }
 0x159   : > { %1640 = vmatprep.mubr.msk.f32.mxu0 %vm1916_vm0, %v1915_v0  ;;  %v674_v9 = vld [vmem:[#allocation2] sm:$0xff]  ;;  %1609 = vmatpush3.msra.mxu0 %v1016_v25 }
 0x15a   : > { %1610 = vmatprep.subr.mxu0 %v1915_v0 }
 0x15b   : > { %1611 = vmatpush3.msra.mxu0 %v1015_v27 }
 0x15c   : > { %1612 = vmatprep.subr.mxu0 %v1915_v0 }
 0x15d   : > { %v675_v10 = vld [vmem:[#allocation2 + $0x8] sm:$0xff]  ;;  %1613 = vmatpush3.msra.mxu0 %v1014_v29 }
 0x15e   : > { %v676_v14 = vpack.c.bf16 %v675_v10, %v674_v9  ;;  %v871_v22 = vld [vmem:[#allocation2 + $0x2] sm:$0xff]  ;;  %v872_v23 = vld [vmem:[#allocation2 + $0xa] sm:$0xff]  ;;  %1614 = vmatprep.subr.mxu0 %v1915_v0 }
 0x15f   : > { %v873_v24 = vpack.c.bf16 %v872_v23, %v871_v22  ;;  %1615 = vmatpush3.msra.mxu0 %v1013_v31 }
 0x160   : > { %1565 = vmatmul.mubr.bf16.vlgmr.msra.gmra.mxu1 %v676_v14  ;;  %1616 = vmatprep.subr.mxu0 %v1915_v0 }
 0x161   : > { %1589 = vmatpush3.bf16.msra.mxu1 %v1779_v13  ;;  %1604 = vmatprep.mubr.msk.bf16.mxu1 %vm1916_vm0, %v1915_v0 }
 0x162   : > { %1590 = vmatprep.subr.bf16.mxu1 %v1915_v0  ;;  %1617 = vmatpush3.msra.mxu0 %v1012_v33 }
 0x163   : > { %1618 = vmatprep.subr.mxu0 %v1915_v0 }
 0x164   : > { %1619 = vmatpush3.msra.mxu0 %v1011_v35 }
 0x165   : > { %1591 = vmatpush3.bf16.msra.mxu1 %v1780_v15  ;;  %1620 = vmatprep.subr.mxu0 %v1915_v0 }
 0x166   : > { %1592 = vmatprep.subr.bf16.mxu1 %v1915_v0  ;;  %1621 = vmatpush3.msra.mxu0 %v1010_v37 }
 0x167   : > { %1622 = vmatprep.subr.mxu0 %v1915_v0 }
 0x168   : > { %1623 = vmatpush3.msra.mxu0 %v1009_v39 }
 0x169   : > { %1593 = vmatpush3.bf16.msra.mxu1 %v1781_v16  ;;  %1624 = vmatprep.subr.mxu0 %v1915_v0 }
 0x16a   : > { %1594 = vmatprep.subr.bf16.mxu1 %v1915_v0  ;;  %1625 = vmatpush3.msra.mxu0 %v1008_v41 }
 0x16b   : > { %1626 = vmatprep.subr.mxu0 %v1915_v0 }
 0x16c   : > { %1627 = vmatpush3.msra.mxu0 %v1007_v43 }
 0x16d   : > { %1595 = vmatpush3.bf16.msra.mxu1 %v1782_v17  ;;  %1628 = vmatprep.subr.mxu0 %v1915_v0 }
 0x16e   : > { %1596 = vmatprep.subr.bf16.mxu1 %v1915_v0  ;;  %1629 = vmatpush3.msra.mxu0 %v1006_v45 }
 0x16f   : > { %1630 = vmatprep.subr.mxu0 %v1915_v0 }
 0x170   : > { %1631 = vmatpush3.msra.mxu0 %v1005_v47 }
 0x171   : > { %1597 = vmatpush3.bf16.msra.mxu1 %v1783_v18  ;;  %1632 = vmatprep.subr.mxu0 %v1915_v0 }
 0x172   : > { %1598 = vmatprep.subr.bf16.mxu1 %v1915_v0  ;;  %1633 = vmatpush3.msra.mxu0 %v1004_v49 }
 0x173   : > { %1634 = vmatprep.subr.mxu0 %v1915_v0 }
 0x174   : > { %1635 = vmatpush3.msra.mxu0 %v1003_v51 }
 0x175   : > { %1599 = vmatpush3.bf16.msra.mxu1 %v1784_v19  ;;  %1636 = vmatprep.subr.mxu0 %v1915_v0 }
 0x176   : > { %1600 = vmatprep.subr.bf16.mxu1 %v1915_v0  ;;  %1637 = vmatpush3.msra.mxu0 %v1002_v53 }
 0x177   : > { %1638 = vmatprep.subr.mxu0 %v1915_v0 }
 0x178   : > { %1639 = vmatpush3.msra.mxu0 %v1001_v55 }
 0x179   : > { %1601 = vmatpush3.bf16.msra.mxu1 %v1785_v20 }
 0x17a   : > { %1602 = vmatprep.subr.bf16.mxu1 %v1915_v0 }
 0x17d   : > { %1603 = vmatpush3.bf16.msra.mxu1 %v1786_v21 }
 0x17e   : > { %1643 = vmatprep.subr.mxu1 %v1915_v0 }
 0x180   : > { %1605 = vmatmul.mubr.bf16.vlgmr.msra.gmra.mxu1 %v873_v24 }
 0x181   : > { %1675 = vmatprep.mubr.msk.f32.mxu1 %vm1916_vm0, %v1915_v0  ;;  %1644 = vmatpush3.msra.mxu1 %v1102_v26 }
 0x182   : > { %1645 = vmatprep.subr.mxu1 %v1915_v0 }
 0x183   : > { %1646 = vmatpush3.msra.mxu1 %v1101_v28 }
 0x184   : > { %1647 = vmatprep.subr.mxu1 %v1915_v0 }
 0x185   : > { %1648 = vmatpush3.msra.mxu1 %v1100_v30 }
 0x186   : > { %1649 = vmatprep.subr.mxu1 %v1915_v0 }
 0x187   : > { %1650 = vmatpush3.msra.mxu1 %v1099_v32 }
 0x188   : > { %1651 = vmatprep.subr.mxu1 %v1915_v0 }
 0x189   : > { %1652 = vmatpush3.msra.mxu1 %v1098_v34 }
 0x18a   : > { %1653 = vmatprep.subr.mxu1 %v1915_v0 }
 0x18b   : > { %1654 = vmatpush3.msra.mxu1 %v1097_v36 }
 0x18c   : > { %1655 = vmatprep.subr.mxu1 %v1915_v0 }
 0x18d   : > { %1656 = vmatpush3.msra.mxu1 %v1096_v38 }
 0x18e   : > { %1657 = vmatprep.subr.mxu1 %v1915_v0 }
 0x18f   : > { %1658 = vmatpush3.msra.mxu1 %v1095_v40 }
 0x190   : > { %1659 = vmatprep.subr.mxu1 %v1915_v0 }
 0x191   : > { %1660 = vmatpush3.msra.mxu1 %v1094_v42 }
 0x192   : > { %1661 = vmatprep.subr.mxu1 %v1915_v0 }
 0x193   : > { %1662 = vmatpush3.msra.mxu1 %v1093_v44 }
 0x194   : > { %1663 = vmatprep.subr.mxu1 %v1915_v0 }
 0x195   : > { %1664 = vmatpush3.msra.mxu1 %v1092_v46 }
 0x196   : > { %1665 = vmatprep.subr.mxu1 %v1915_v0 }
 0x197   : > { %1666 = vmatpush3.msra.mxu1 %v1091_v48 }
 0x198   : > { %1667 = vmatprep.subr.mxu1 %v1915_v0 }
 0x199   : > { %1668 = vmatpush3.msra.mxu1 %v1090_v50 }
 0x19a   : > { %1669 = vmatprep.subr.mxu1 %v1915_v0 }
 0x19b   : > { %1670 = vmatpush3.msra.mxu1 %v1089_v52 }
 0x19c   : > { %1671 = vmatprep.subr.mxu1 %v1915_v0 }
 0x19d   : > { %1672 = vmatpush3.msra.mxu1 %v1088_v54 }
 0x19e   : > { %1673 = vmatprep.subr.mxu1 %v1915_v0 }
 0x19f   : > { %1674 = vmatpush3.msra.mxu1 %v1087_v56 }
 0x218   : > { %v864_v57 = vpop.f32.mrf.mxu0 }
 0x21a   : > { %v1586_v58 = vpop.f32.mrf.mxu0 }
 0x21c   : > { %v867_v59 = vpop.f32.mrf.mxu0 }
 0x21e   : > { %v1587_v60 = vpop.f32.mrf.mxu0 }
 0x220   : > { %v775_v61 = vpop.f32.mrf.mxu1 }
 0x221   : > { %v865_v2 = vadd.f32 %v864_v57, %v775_v61 }
 0x222   : > { %v1566_v62 = vpop.f32.mrf.mxu1 }
 0x224   : > { %v778_v63 = vpop.f32.mrf.mxu1 }
 0x225   : > { %v868_v7 = vadd.f32 %v867_v59, %v778_v63 }
 0x226   : > { %v1567_v1 = vpop.f32.mrf.mxu1 }
 0x240   : > { %v973_v3 = vpop.f32.mrf.mxu1 }
 0x241   : > { %v980_v5 = vadd.f32 %v973_v3, %v865_v2 }
 0x242   : > { %v1606_v6 = vpop.f32.mrf.mxu1 }
 0x243   : > { %v989_v0 = vadd.f32 %v1394_v4, %v980_v5 }
 0x244   : > { %v976_v8 = vpop.f32.mrf.mxu1 }
 0x245   : > { %v991_v9 = vadd.f32 %v989_v0, %v2139_v11  ;;  %v981_v10 = vadd.f32 %v976_v8, %v868_v7 }
 0x246   : > { %v1607_v13 = vpop.f32.mrf.mxu1 }
 0x247   : > { %v993_v14 = vmax.f32 %v991_v9, 0.0  ;;  %v990_v15 = vadd.f32 %v1394_v4, %v981_v10 }
 0x249   : > { %995 = vst [vmem:[#allocation2] sm:$0xff] %v993_v14  ;;  %v992_v16 = vadd.f32 %v990_v15, %v2142_v12 }
 0x24b   : > { %v994_v17 = vmax.f32 %v992_v16, 0.0 }
 0x24d   : > { %996 = vst [vmem:[#allocation2 + $0x8] sm:$0xff] %v994_v17 }
 0x254   : > { %v997_v18 = vld [vmem:[#allocation2] ss:$2 sm:$0xff]  ;;  %v999_v19 = vld [vmem:[#allocation2 + $0x1] ss:$2 sm:$0xff] }
 0x255   : > { %v1000_v20 = vmax.f32 %v997_v18, %v999_v19 }
 0x257   : > { %1641 = vmatmul.mubr.f32.vlgmr.msra.gmra.mxu0 %v1000_v20  ;;  %1676 = vmatmul.mubr.f32.vlgmr.msra.gmra.mxu1 %v1000_v20 }
 0x317   : > { %v1083_v11 = vpop.f32.mrf.mxu0  ;;  %v1169_v21 = vpop.f32.mrf.mxu1 }
 0x318   : > { %v1173_v22 = vmax.f32 %v1083_v11, %v1169_v21 }
 0x319   : > { %v1642_v12 = vpop.f32.mrf.mxu0  ;;  %v1677_v23 = vpop.f32.mrf.mxu1 }
 0x31a   : > { %1175 = vst.msk [vmem:[%s309_s18] sm:$0xff] %vm1174_vm1, %v1173_v22 }
 0x31b   : > { %1854 = shalt.err (!%p1851_p0)
}
 0x31c   : > { %s1855_s21 = scalar_lea.hbm %s2450_s26, 128  ;;  %s1859_s30 = scalar_lea.hbm %s2500_s7, 256 }
 0x31d   : > { %p1856_p4 = scmp.ne.s32.totalorder %s2450_s26, %s1855_s21  ;;  %p1860_p6 = scmp.lt.s32.totalorder %s2450_s26, %s2500_s7 }
 0x31e   : > { %p1861_p13 = scmp.lt.s32.totalorder %s1859_s30, %s1855_s21 }
 0x31f   : > { %p1857_p11 = pnand %p1856_p4, %p2523_p1 }
 0x320   : > { %p1862_p3 = por %p1861_p13, %p1860_p6 }
 0x321   : > { %p1858_p5 = pneg %p1857_p11 }
 0x323   : > { %p1863_p12 = pnand %p1862_p3, %p1858_p5 }
 0x325   : > { %1866 = shalt.err (!%p1863_p12)
}
 0x326   : > { %1684 = dma.vmem_to_hbm [thread:$0]  (%p2523_p1), %s2452_s10, 128, %s2450_s26, %s1177_s28  }
 0x327 PF: > { %s1202_s20 = sand.u32 1, %s1897_s24   ;;  %p2524_p7 = scmp.ne.s32.totalorder %s2514_s14, 0 }
 0x328   : > { %p2525_p8 = scmp.ge.s32.totalorder %s1909_s27, 2  ;;  %s1203_s16 = scalar_lea.sflag [#allocation5], %s1202_s20 }
 0x32a   : > { %p1695_p9 = pnand %p2525_p8, %p2524_p7 }
 0x32c   : > { %p1696_p10 = pneg %p1695_p9 }
 0x32e   : > { %1892 = dma.done.wait (%p1696_p10), %s1203_s16, 128  }
 0x32f   : > { %1894 = vsyncadd (%p1696_p10), %s1203_s16, 4294967168  ;;  %s2526_s27 = sld [smem:[#allocation13_spill]]  ;;  %s2529_s24 = smov %s1901_s25 }
 0x330   : > { %s2527_s18 = sld [smem:[#allocation12_spill]] }
 0x331   : > { %s2528_s26 = sld [smem:[#allocation14_spill]] }
 0x335   : > { %p21_p2 = scmp.ge.s32.totalorder %s2526_s27, 4  }
 0x336   : > { %s2530_s25 = smov %s2527_s18 }
 0x337   :  { %23 = sbr.rel (!%p21_p2) target bundleno = 6 (0x6), region = 102 }
 0x33c   :  { %1208 = vsyncpa [#allocation4], 1 }
 0x33d   :  { %1210 = vsyncpa [#allocation4 + $0x1], 1 }
 0x33e   :  { %1211 = vsyncpa [#allocation7], 1 }
 0x33f   :  { %1212 = vsyncpa [#allocation5], 1 }
 0x340   :  { %1214 = vsyncpa [#allocation5 + $0x1], 1 }

</bundles_post_ra>
